<compile_context>
chip_gen: v5e
topology: v5e:2x2
jax: 0.10.0
libtpu: 0.0.40
codegen_flags: <defaults>
</compile_context>

<pallas_src>
import functools

import jax
import jax.numpy as jnp
from jax.experimental import pallas as pl
from jax.experimental.pallas import tpu as pltpu

EPS = 1e-4  # matches nn.BatchNorm2d(channels, eps=0.0001) in the module


def _elu(x):
    # ELU(alpha=1); exp only ever sees non-positive inputs.
    return jnp.where(x > 0, x, jnp.exp(jnp.minimum(x, 0.0)) - 1.0)


def _round_up(v, m):
    return ((v + m - 1) // m) * m


def _imgs_per_block(N, H, target_rows=128):
    """Pick images per grid step so M = imgs*H reaches ~128 MXU rows."""
    divs = [d for d in range(1, N + 1) if N % d == 0]
    meets = [d for d in divs if d * H >= target_rows]
    if meets:
        return meets[0]                       # smallest block that fills the rows
    under = [d for d in divs if d * H <= target_rows]
    return under[-1] if under else 1


# --------------------------- in-kernel conv helper ---------------------------

def _conv3x3_fused(act_bf, w_ref, imgs, H):
    """3x3 same-padding conv on a lane-flat block of `imgs` stacked images.

    act_bf: (imgs*H, L) bf16 activation, lane layout w*C + c.
    w_ref : Ref (3*L, ncols) bf16 banded weights, K stacked as
            [dh=-1 | dh=0 | dh=+1]; dw taps (incl. edge zeroing) are folded in.
    Returns (imgs*H, ncols) f32 accumulator (bias NOT included).
    """
    M, L = act_bf.shape
    a3 = act_bf.reshape(imgs, H, L)
    zrow = jnp.zeros((imgs, 1, L), jnp.bfloat16)
    tap_m = jnp.concatenate([zrow, a3[:, :H - 1, :]], axis=1).reshape(M, L)   # x[r-1]
    tap_p = jnp.concatenate([a3[:, 1:, :], zrow], axis=1).reshape(M, L)       # x[r+1]
    taps = jnp.concatenate([tap_m, act_bf, tap_p], axis=1)                    # (M, 3L)
    return jnp.dot(taps, w_ref[...], preferred_element_type=jnp.float32)


# -------------------------------- kernels ------------------------------------

def _stage1_kernel(imgs, H, W, c_b,
                   x_ref, a1_ref, c1_ref, w1_ref, b1_ref,
                   xcat_ref, stats_ref):
    # ELU(BN1(x)) -> conv1 (all first_out channels, one banded matmul).
    act = _elu(x_ref[...] * a1_ref[...] + c1_ref[...]).astype(jnp.bfloat16)
    acc = _conv3x3_fused(act, w1_ref, imgs, H)
    xcat = (acc + b1_ref[...]).astype(jnp.bfloat16)
    xcat_ref[...] = xcat
    # BN2 partial stats over the bottleneck lanes, from the exact bf16 values
    # stage 2 will read back.
    xb = xcat[:, :W * c_b].astype(jnp.float32)
    s = jnp.sum(xb, axis=0, keepdims=True)
    ss = jnp.sum(xb * xb, axis=0, keepdims=True)
    stats_ref[...] = jnp.concatenate([s, ss], axis=0)[None]   # (1, 2, W*c_b)


def _stage2_identity_kernel(imgs, H, W, c_b,
                            xcat_ref, x_ref, a2_ref, c2_ref, w2_ref, b2_ref,
                            o_ref):
    # ELU(BN2(xb)) -> conv2 ; identity skip added straight from the input block.
    xb = xcat_ref[:, :W * c_b].astype(jnp.float32)
    act = _elu(xb * a2_ref[...] + c2_ref[...]).astype(jnp.bfloat16)
    acc = _conv3x3_fused(act, w2_ref, imgs, H)
    o_ref[...] = acc + b2_ref[...] + x_ref[...]


def _stage2_convskip_kernel(imgs, H, W, c_b, c_out,
                            xcat_ref, a2_ref, c2_ref, w2_ref, b2_ref, o_ref):
    # xcat lanes are ordered [bottleneck | skip | zero-pad].
    xb = xcat_ref[:, :W * c_b].astype(jnp.float32)
    skip = xcat_ref[:, W * c_b:W * c_b + W * c_out].astype(jnp.float32)
    act = _elu(xb * a2_ref[...] + c2_ref[...]).astype(jnp.bfloat16)
    acc = _conv3x3_fused(act, w2_ref, imgs, H)
    o_ref[...] = acc + b2_ref[...] + skip


# ------------------------- wrapper-side weight prep --------------------------

def _banded_conv_weights(w_oihw, W, col_of, ncols, dtype=jnp.bfloat16):
    """PyTorch (O, I, 3, 3) conv weight -> (3*W*I, ncols) banded matmul weights.

    Row block t (= dh+1) contracts the dh-shifted activation rows (lane layout
    w'*I + ci); dw taps that fall outside [0, W) are zeroed (lane padding is
    folded into the weights).  Output column layout is col_of(w, o).
    """
    O, I, KH, KW = w_oihw.shape
    wi = jnp.arange(W)[:, None, None, None]
    di = jnp.arange(KW)[None, :, None, None]           # dw + 1
    ii = jnp.arange(I)[None, None, :, None]
    oi = jnp.arange(O)[None, None, None, :]
    src_w = wi + di - 1                                  # w + dw
    valid = (src_w >= 0) & (src_w < W)
    rows = jnp.broadcast_to(jnp.clip(src_w, 0, W - 1) * I + ii, (W, KW, I, O))
    cols = jnp.broadcast_to(col_of(wi, oi), (W, KW, I, O))
    slabs = []
    for t in range(KH):                                  # t = dh + 1
        vals = jnp.broadcast_to(
            jnp.transpose(w_oihw[:, :, t, :], (2, 1, 0))[None], (W, KW, I, O))
        vals = jnp.where(valid, vals, 0.0)               # zero out-of-range taps
        m = jnp.zeros((W * I, ncols), jnp.float32)
        slabs.append(m.at[rows, cols].add(vals))
    return jnp.concatenate(slabs, axis=0).astype(dtype)  # (3*W*I, ncols)


def resblock_pallas(x_nchw, params):
    N, c_in, H, W = x_nchw.shape
    c_b = c_in // 2
    c_out = params['w2'].shape[0]
    skip = (c_in == c_out)
    f32, bf16 = jnp.float32, jnp.bfloat16

    imgs = _imgs_per_block(N, H)
    n_blocks = N // imgs
    M = imgs * H

    # NCHW -> lane-flat (N*H, W*c_in).
    x_nhwc = jnp.transpose(x_nchw, (0, 2, 3, 1)).astype(f32)
    x2 = x_nhwc.reshape(N * H, W * c_in)

    # ---- BN1 folded to per-channel affine (batch stats, biased var) ------------
    mean1 = jnp.mean(x_nhwc, axis=(0, 1, 2))
    var1 = jnp.var(x_nhwc, axis=(0, 1, 2))
    a1 = params['g1'].astype(f32) * jax.lax.rsqrt(var1 + EPS)
    c1 = params['b1'].astype(f32) - mean1 * a1
    a1_row = jnp.tile(a1, W).reshape(1, W * c_in)
    c1_row = jnp.tile(c1, W).reshape(1, W * c_in)

    # ---- conv1 banded weights; columns = [bottleneck | skip | zero-pad] --------
    ncols1 = W * c_b + (0 if skip else W * c_out)
    ncols1_pad = _round_up(max(ncols1, 128), 128)        # lane-dense stores

    def col1(w, o):
        return jnp.where(o < c_b, w * c_b + o, W * c_b + w * c_out + (o - c_b))

    w1_band = _banded_conv_weights(params['w1'].astype(f32), W, col1, ncols1_pad)
    bias1 = params['c1b'].astype(f32)
    b1_parts = [jnp.tile(bias1[:c_b], W)]
    if not skip:
        b1_parts.append(jnp.tile(bias1[c_b:], W))
    b1_parts.append(jnp.zeros((ncols1_pad - ncols1,), f32))
    b1_row = jnp.concatenate(b1_parts).reshape(1, ncols1_pad)

    grid = (n_blocks,)
    # 48 MiB scoped VMEM: above the 16/32 MiB defaults, under v7x's 64 MiB physical.
    cp = pltpu.CompilerParams(dimension_semantics=("parallel",),
                              vmem_limit_bytes=48 * 1024 * 1024)

    # ---- stage 1: ELU(BN1(x)) -> conv1 ; emits x_cat (bf16) + BN2 partial stats -
    kern1 = functools.partial(_stage1_kernel, imgs, H, W, c_b)
    xcat, stats = pl.pallas_call(
        kern1,
        out_shape=(jax.ShapeDtypeStruct((N * H, ncols1_pad), bf16),
                   jax.ShapeDtypeStruct((n_blocks, 2, W * c_b), f32)),
        grid=grid,
        in_specs=[
            pl.BlockSpec((M, W * c_in), lambda n: (n, 0)),
            pl.BlockSpec((1, W * c_in), lambda n: (0, 0)),
            pl.BlockSpec((1, W * c_in), lambda n: (0, 0)),
            pl.BlockSpec((3 * W * c_in, ncols1_pad), lambda n: (0, 0)),
            pl.BlockSpec((1, ncols1_pad), lambda n: (0, 0)),
        ],
        out_specs=(pl.BlockSpec((M, ncols1_pad), lambda n: (n, 0)),
                   pl.BlockSpec((1, 2, W * c_b), lambda n: (n, 0, 0))),
        compiler_params=cp,
    )(x2, a1_row, c1_row, w1_band, b1_row)

    # ---- BN2 affine from the per-block partial sums (no re-read of x_cat) ------
    count = float(N * H * W)
    s = stats.reshape(n_blocks, 2, W, c_b).sum(axis=(0, 2))    # (2, c_b)
    mean2 = s[0] / count
    var2 = jnp.maximum(s[1] / count - mean2 * mean2, 0.0)
    a2 = params['g2'].astype(f32) * jax.lax.rsqrt(var2 + EPS)
    c2 = params['b2'].astype(f32) - mean2 * a2
    a2_row = jnp.tile(a2, W).reshape(1, W * c_b)
    c2_row = jnp.tile(c2, W).reshape(1, W * c_b)

    # ---- conv2 banded weights ---------------------------------------------------
    # TODO(synk): pad+slice the output columns when W*c_out % 128 != 0.
    def col2(w, o):
        return w * c_out + o

    w2_band = _banded_conv_weights(params['w2'].astype(f32), W, col2, W * c_out)
    b2_row = jnp.tile(params['c2b'].astype(f32), W).reshape(1, W * c_out)

    # ---- stage 2: ELU(BN2(xb)) -> conv2 -> + skip -------------------------------
    if skip:
        kern2 = functools.partial(_stage2_identity_kernel, imgs, H, W, c_b)
        out2 = pl.pallas_call(
            kern2,
            out_shape=jax.ShapeDtypeStruct((N * H, W * c_out), f32),
            grid=grid,
            in_specs=[
                pl.BlockSpec((M, ncols1_pad), lambda n: (n, 0)),   # x_cat (bf16)
                pl.BlockSpec((M, W * c_in), lambda n: (n, 0)),     # identity skip
                pl.BlockSpec((1, W * c_b), lambda n: (0, 0)),
                pl.BlockSpec((1, W * c_b), lambda n: (0, 0)),
                pl.BlockSpec((3 * W * c_b, W * c_out), lambda n: (0, 0)),
                pl.BlockSpec((1, W * c_out), lambda n: (0, 0)),
            ],
            out_specs=pl.BlockSpec((M, W * c_out), lambda n: (n, 0)),
            compiler_params=cp,
        )(xcat, x2, a2_row, c2_row, w2_band, b2_row)
    else:
        kern2 = functools.partial(_stage2_convskip_kernel, imgs, H, W, c_b, c_out)
        out2 = pl.pallas_call(
            kern2,
            out_shape=jax.ShapeDtypeStruct((N * H, W * c_out), f32),
            grid=grid,
            in_specs=[
                pl.BlockSpec((M, ncols1_pad), lambda n: (n, 0)),   # [xb | skip | pad]
                pl.BlockSpec((1, W * c_b), lambda n: (0, 0)),
                pl.BlockSpec((1, W * c_b), lambda n: (0, 0)),
                pl.BlockSpec((3 * W * c_b, W * c_out), lambda n: (0, 0)),
                pl.BlockSpec((1, W * c_out), lambda n: (0, 0)),
            ],
            out_specs=pl.BlockSpec((M, W * c_out), lambda n: (n, 0)),
            compiler_params=cp,
        )(xcat, a2_row, c2_row, w2_band, b2_row)

    # back to NCHW
    return jnp.transpose(out2.reshape(N, H, W, c_out), (0, 3, 1, 2))


# ---------------- plain-JAX reference (for correctness check) ----------------

def resblock_reference(x, params):
    c_in = x.shape[1]
    c_b = c_in // 2
    c_out = params['w2'].shape[0]
    skip = (c_in == c_out)

    def bn(v, g, b):
        mean = jnp.mean(v, axis=(0, 2, 3), keepdims=True)
        var = jnp.var(v, axis=(0, 2, 3), keepdims=True)
        return (v - mean) / jnp.sqrt(var + EPS) * g.reshape(1, -1, 1, 1) + b.reshape(1, -1, 1, 1)

    def conv(v, w, b):
        y = jax.lax.conv_general_dilated(v, w, (1, 1), 'SAME',
                                         dimension_numbers=('NCHW', 'OIHW', 'NCHW'))
        return y + b.reshape(1, -1, 1, 1)

    h = _elu(bn(x, params['g1'], params['b1']))
    xcat = conv(h, params['w1'], params['c1b'])
    xb = xcat[:, :c_b]
    sk = x if skip else xcat[:, c_b:]
    h2 = _elu(bn(xb, params['g2'], params['b2']))
    return conv(h2, params['w2'], params['c2b']) + sk


def init_params(key, c_in, c_out):
    c_b = c_in // 2
    first_out = c_b if c_in == c_out else c_b + c_out
    ks = jax.random.split(key, 8)
    return {
        'g1': 1.0 + 0.1 * jax.random.normal(ks[0], (c_in,), jnp.float32),
        'b1': 0.1 * jax.random.normal(ks[1], (c_in,), jnp.float32),
        'w1': 0.1 * jax.random.normal(ks[2], (first_out, c_in, 3, 3), jnp.float32),
        'c1b': 0.1 * jax.random.normal(ks[3], (first_out,), jnp.float32),
        'g2': 1.0 + 0.1 * jax.random.normal(ks[4], (c_b,), jnp.float32),
        'b2': 0.1 * jax.random.normal(ks[5], (c_b,), jnp.float32),
        'w2': 0.1 * jax.random.normal(ks[6], (c_out, c_b, 3, 3), jnp.float32),
        'c2b': 0.1 * jax.random.normal(ks[7], (c_out,), jnp.float32),
    }


if __name__ == "__main__":
    key = jax.random.PRNGKey(0)
    kx1, kx2, kp1, kp2 = jax.random.split(key, 4)

    # Tolerance reflects bf16 MXU matmuls + bf16 inter-stage x_cat vs. an all-f32 reference.
    TOL = 5e-2

    c_in, H, W = 8, 16, 16

    # Case 1: channel_in == channel_out (identity skip); 2 images per grid block.
    N1 = 4
    x1 = jax.random.normal(kx1, (N1, c_in, H, W), jnp.float32)
    p1 = init_params(kp1, c_in, c_in)
    out1 = jax.block_until_ready(resblock_pallas(x1, p1))
    ref1 = resblock_reference(x1, p1)
    assert out1.shape == (N1, c_in, H, W)
    assert jnp.allclose(out1, ref1, atol=TOL, rtol=TOL), float(jnp.max(jnp.abs(out1 - ref1)))

    # Case 2: channel_in != channel_out (skip comes from conv1 output channels).
    N2, c_out2 = 2, 16
    x2in = jax.random.normal(kx2, (N2, c_in, H, W), jnp.float32)
    p2 = init_params(kp2, c_in, c_out2)
    out2 = jax.block_until_ready(resblock_pallas(x2in, p2))
    ref2 = resblock_reference(x2in, p2)
    assert out2.shape == (N2, c_out2, H, W)
    assert jnp.allclose(out2, ref2, atol=TOL, rtol=TOL), float(jnp.max(jnp.abs(out2 - ref2)))

    print("KERNEL_OK")
</pallas_src>

<mosaic_0001>
module attributes {stable_mosaic.version = 11 : i64} {
  func.func @_stage1_kernel(%arg0: i32, %arg1: memref<64x128xf32, #tpu.memory_space<vmem>>, %arg2: memref<1x128xf32, #tpu.memory_space<vmem>>, %arg3: memref<1x128xf32, #tpu.memory_space<vmem>>, %arg4: memref<384x128xbf16, #tpu.memory_space<vmem>>, %arg5: memref<1x128xf32, #tpu.memory_space<vmem>>, %arg6: memref<64x128xbf16, #tpu.memory_space<vmem>>, %arg7: memref<1x2x64xf32, #tpu.memory_space<vmem>>) attributes {dimension_semantics = [#tpu.dimension_semantics<parallel>], iteration_bounds = array<i64: 1>, scalar_prefetch = 0 : i64, scratch_operands = 0 : i64, tpu.core_type = #tpu.core_type<tc>, window_params = [{transform_indices = @transform_0, window_bounds = array<i64: 64, 128>}, {pipeline_mode = #tpu.pipeline_mode<synchronous>, transform_indices = @transform_1, window_bounds = array<i64: 1, 128>}, {pipeline_mode = #tpu.pipeline_mode<synchronous>, transform_indices = @transform_2, window_bounds = array<i64: 1, 128>}, {pipeline_mode = #tpu.pipeline_mode<synchronous>, transform_indices = @transform_3, window_bounds = array<i64: 384, 128>}, {pipeline_mode = #tpu.pipeline_mode<synchronous>, transform_indices = @transform_4, window_bounds = array<i64: 1, 128>}, {transform_indices = @transform_5, window_bounds = array<i64: 64, 128>}, {transform_indices = @transform_6, window_bounds = array<i64: 1, 2, 64>}]} {
    %c0 = arith.constant 0 : index
    %c0_0 = arith.constant 0 : index
    %0 = vector.load %arg1[%c0, %c0_0] : memref<64x128xf32, #tpu.memory_space<vmem>>, vector<64x128xf32>
    %c0_1 = arith.constant 0 : index
    %c0_2 = arith.constant 0 : index
    %1 = vector.load %arg2[%c0_1, %c0_2] : memref<1x128xf32, #tpu.memory_space<vmem>>, vector<1x128xf32>
    %2 = vector.broadcast %1 : vector<1x128xf32> to vector<64x128xf32>
    %3 = arith.mulf %0, %2 : vector<64x128xf32>
    %c0_3 = arith.constant 0 : index
    %c0_4 = arith.constant 0 : index
    %4 = vector.load %arg3[%c0_3, %c0_4] : memref<1x128xf32, #tpu.memory_space<vmem>>, vector<1x128xf32>
    %5 = vector.broadcast %4 : vector<1x128xf32> to vector<64x128xf32>
    %6 = arith.addf %3, %5 : vector<64x128xf32>
    %cst = arith.constant 0.000000e+00 : f32
    %7 = vector.broadcast %cst : f32 to vector<64x128xf32>
    %8 = arith.cmpf ogt, %6, %7 : vector<64x128xf32>
    %cst_5 = arith.constant 0.000000e+00 : f32
    %9 = vector.broadcast %cst_5 : f32 to vector<64x128xf32>
    %10 = arith.minimumf %6, %9 : vector<64x128xf32>
    %11 = math.exp %10 : vector<64x128xf32>
    %cst_6 = arith.constant 1.000000e+00 : f32
    %12 = vector.broadcast %cst_6 : f32 to vector<64x128xf32>
    %13 = arith.subf %11, %12 : vector<64x128xf32>
    %14 = arith.select %8, %6, %13 : vector<64x128xi1>, vector<64x128xf32>
    %15 = arith.truncf %14 : vector<64x128xf32> to vector<64x128xbf16>
    %16 = vector.shape_cast %15 : vector<64x128xbf16> to vector<4x16x128xbf16>
    %cst_7 = arith.constant 0.000000e+00 : bf16
    %17 = vector.broadcast %cst_7 : bf16 to vector<4x1x128xbf16>
    %18 = vector.extract_strided_slice %16 {offsets = [0, 0, 0], sizes = [4, 15, 128], strides = [1, 1, 1]} : vector<4x16x128xbf16> to vector<4x15x128xbf16>
    %19 = tpu.concatenate %17, %18 in 1 : vector<4x1x128xbf16>, vector<4x15x128xbf16> -> vector<4x16x128xbf16>
    %20 = vector.shape_cast %19 : vector<4x16x128xbf16> to vector<64x128xbf16>
    %21 = vector.extract_strided_slice %16 {offsets = [0, 1, 0], sizes = [4, 15, 128], strides = [1, 1, 1]} : vector<4x16x128xbf16> to vector<4x15x128xbf16>
    %22 = tpu.concatenate %21, %17 in 1 : vector<4x15x128xbf16>, vector<4x1x128xbf16> -> vector<4x16x128xbf16>
    %23 = vector.shape_cast %22 : vector<4x16x128xbf16> to vector<64x128xbf16>
    %24 = tpu.concatenate %20, %15, %23 in 1 : vector<64x128xbf16>, vector<64x128xbf16>, vector<64x128xbf16> -> vector<64x384xbf16>
    %c0_8 = arith.constant 0 : index
    %c0_9 = arith.constant 0 : index
    %25 = vector.load %arg4[%c0_8, %c0_9] : memref<384x128xbf16, #tpu.memory_space<vmem>>, vector<384x128xbf16>
    %cst_10 = arith.constant dense<0.000000e+00> : vector<64x128xf32>
    %26 = tpu.matmul %24, %25, %cst_10 {dimension_numbers = #tpu.dot_dimension_numbers<[1], [0], [0], [1], [0, 0, 1, 1], [], []>} : vector<64x384xbf16>, vector<384x128xbf16>, vector<64x128xf32> -> vector<64x128xf32>
    %c0_11 = arith.constant 0 : index
    %c0_12 = arith.constant 0 : index
    %27 = vector.load %arg5[%c0_11, %c0_12] : memref<1x128xf32, #tpu.memory_space<vmem>>, vector<1x128xf32>
    %28 = vector.broadcast %27 : vector<1x128xf32> to vector<64x128xf32>
    %29 = arith.addf %26, %28 : vector<64x128xf32>
    %30 = arith.truncf %29 : vector<64x128xf32> to vector<64x128xbf16>
    %c0_13 = arith.constant 0 : index
    %c0_14 = arith.constant 0 : index
    %31 = vector.load %arg6[%c0_13, %c0_14] : memref<64x128xbf16, #tpu.memory_space<vmem>>, vector<64x128xbf16>
    tpu.vector_store %arg6[%c0_13, %c0_14], %30 {strides = array<i32>} : memref<64x128xbf16, #tpu.memory_space<vmem>>, vector<64x128xbf16>,
    %32 = vector.extract_strided_slice %30 {offsets = [0, 0], sizes = [64, 64], strides = [1, 1]} : vector<64x128xbf16> to vector<64x64xbf16>
    %33 = arith.extf %32 : vector<64x64xbf16> to vector<64x64xf32>
    %cst_15 = arith.constant dense<0.000000e+00> : vector<64xf32>
    %34 = vector.multi_reduction <add>, %33, %cst_15 [0] : vector<64x64xf32> to vector<64xf32>
    %35 = vector.shape_cast %34 : vector<64xf32> to vector<1x64xf32>
    %36 = arith.mulf %33, %33 : vector<64x64xf32>
    %cst_16 = arith.constant dense<0.000000e+00> : vector<64xf32>
    %37 = vector.multi_reduction <add>, %36, %cst_16 [0] : vector<64x64xf32> to vector<64xf32>
    %38 = vector.shape_cast %37 : vector<64xf32> to vector<1x64xf32>
    %39 = tpu.concatenate %35, %38 in 0 : vector<1x64xf32>, vector<1x64xf32> -> vector<2x64xf32>
    %40 = vector.shape_cast %39 : vector<2x64xf32> to vector<1x2x64xf32>
    %c0_17 = arith.constant 0 : index
    %c0_18 = arith.constant 0 : index
    %c0_19 = arith.constant 0 : index
    %41 = vector.load %arg7[%c0_17, %c0_18, %c0_19] : memref<1x2x64xf32, #tpu.memory_space<vmem>>, vector<1x2x64xf32>
    tpu.vector_store %arg7[%c0_17, %c0_18, %c0_19], %40 {strides = array<i32>} : memref<1x2x64xf32, #tpu.memory_space<vmem>>, vector<1x2x64xf32>,
    return
  }
  func.func @transform_0(%arg0: i32) -> (i32, i32) {
    %c0_i32 = arith.constant 0 : i32
    %c0_i32_0 = arith.constant 0 : i32
    return %arg0, %c0_i32 : i32, i32
  }
  func.func @transform_1(%arg0: i32) -> (i32, i32) {
    %c0_i32 = arith.constant 0 : i32
    %c0_i32_0 = arith.constant 0 : i32
    %c0_i32_1 = arith.constant 0 : i32
    return %c0_i32, %c0_i32_0 : i32, i32
  }
  func.func @transform_2(%arg0: i32) -> (i32, i32) {
    %c0_i32 = arith.constant 0 : i32
    %c0_i32_0 = arith.constant 0 : i32
    %c0_i32_1 = arith.constant 0 : i32
    return %c0_i32, %c0_i32_0 : i32, i32
  }
  func.func @transform_3(%arg0: i32) -> (i32, i32) {
    %c0_i32 = arith.constant 0 : i32
    %c0_i32_0 = arith.constant 0 : i32
    %c0_i32_1 = arith.constant 0 : i32
    return %c0_i32, %c0_i32_0 : i32, i32
  }
  func.func @transform_4(%arg0: i32) -> (i32, i32) {
    %c0_i32 = arith.constant 0 : i32
    %c0_i32_0 = arith.constant 0 : i32
    %c0_i32_1 = arith.constant 0 : i32
    return %c0_i32, %c0_i32_0 : i32, i32
  }
  func.func @transform_5(%arg0: i32) -> (i32, i32) {
    %c0_i32 = arith.constant 0 : i32
    %c0_i32_0 = arith.constant 0 : i32
    return %arg0, %c0_i32 : i32, i32
  }
  func.func @transform_6(%arg0: i32) -> (i32, i32, i32) {
    %c0_i32 = arith.constant 0 : i32
    %c0_i32_0 = arith.constant 0 : i32
    %c0_i32_1 = arith.constant 0 : i32
    return %arg0, %c0_i32, %c0_i32_0 : i32, i32, i32
  }
}

</mosaic_0001>

<bundles_post_ra>
// kernel: tpu_custom_call.1
= control target key start
LH: loop header
LB: loop body
LE: loop exit
PB: predicated region body
PF: predicated region fallthrough
CT: control target
= control target key end

     0   :  { %12 = vsyncpa [#allocation3], 0  ;;  %s1128_s0 = inlined_call_operand.hbm [shape: f32[64,128], index: 0, kind: input, shape index: {}]   ;;  %s1129_s1 = inlined_call_operand.hbm [shape: f32[1,128], index: 1, kind: input, shape index: {}]   ;;  %s1130_s2 = inlined_call_operand.vmem [shape: f32[1,128], index: 2, kind: input, shape index: {}]   ;;  %s1131_s3 = inlined_call_operand.hbm [shape: bf16[384,128], index: 3, kind: input, shape index: {}]   ;;  %s1132_s4 = inlined_call_operand.vmem [shape: f32[1,128], index: 4, kind: input, shape index: {}]   ;;  %s1133_s5 = inlined_call_operand.hbm [shape: bf16[64,128], index: 5, kind: output, shape index: {0}]   ;;  %s1134_s6 = inlined_call_operand.hbm [shape: f32[1,2,64], index: 6, kind: output, shape index: {1}]  }
   0x1   :  { %13 = vsyncpa [#allocation6], 0 }
   0x2   :  { %14 = vsyncpa [#allocation4], 0  ;;  %s34_s23 = sshll.u32 %s1129_s1, 4  ;;  %s35_s23 = int_to_ptr.hbm [resolvable:$true] %s34_s23 }
   0x3   :  { %15 = vsyncpa [#allocation10], 0  ;;  %s953_s24 = smov [#allocation5]   ;;  %s20_s28 = sshll.u32 %s1128_s0, 4  ;;  %s21_s28 = int_to_ptr.hbm [resolvable:$true] %s20_s28 }
   0x4   :  { %s36_s25 = sshll.u32 %s953_s24, 4  ;;  %s954_s29 = smov [#allocation2]   ;;  %s37_s25 = int_to_ptr.vmem [resolvable:$true] %s36_s25 }
   0x5   :  { %39 = dma.hbm_to_vmem [thread:$0]  %s35_s23, 16, %s37_s25, [#allocation6]  }
   0x6   :  { %s22_s30 = sshll.u32 %s954_s29, 4  ;;  %s955_s7 = smov 128   ;;  %s23_s30 = int_to_ptr.vmem [resolvable:$true] %s22_s30 }
   0x7   :  { %s956_s8 = smov 8   ;;  %s46_s1 = sshll.u32 %s1131_s3, 4  ;;  %s47_s1 = int_to_ptr.hbm [resolvable:$true] %s46_s1 }
   0x8   :  { %28 = dma.hbm_to_vmem [thread:$0]  %s21_s28, 1024, %s23_s30, [#allocation3], %s955_s7, %s955_s7, %s956_s8  }
   0x9   :  { %s957_s11 = smov [#allocation7]   ;;  %s958_s13 = smov 64  }
   0xa   :  { %s48_s12 = sshll.u32 %s957_s11, 4  ;;  %s959_s14 = smov 4   ;;  %s49_s12 = int_to_ptr.vmem [resolvable:$true] %s48_s12 }
   0xb   :  { %54 = dma.hbm_to_vmem [thread:$0]  %s47_s1, 3072, %s49_s12, [#allocation6], %s958_s13, %s958_s13, %s959_s14  }
   0xc   :  { %945 = dma.done.wait [#allocation3], 1024  }
   0xd   :  { %946 = vsyncadd [#allocation3], 4294966272 }
   0xe   :  { %947 = dma.done.wait [#allocation6], 3088  }
   0xf   :  { %948 = vsyncadd [#allocation6], 4294964208  ;;  %v749_v0 = vld [vmem:[#allocation7 + $0x38] sm:$0xff]  ;;  %v748_v3 = vld [vmem:[#allocation7 + $0x30] sm:$0xff]  ;;  %vm210_vm6 = vcmask 1040384   ;;  %vm229_vm8 = vcmask 1047552  }
  0x10   :  { %v757_v1 = vld [vmem:[#allocation7 + $0x78] sm:$0xff]  ;;  %436 = vmatpush.bf16.msra.mxu0 %v749_v0  ;;  %v756_v4 = vld [vmem:[#allocation7 + $0x70] sm:$0xff]  ;;  %789 = vmatpush.bf16.msra.mxu3 %v749_v0  ;;  %v747_v6 = vld [vmem:[#allocation7 + $0x28] sm:$0xff]  ;;  %vm211_vm7 = vsmask.f32 256  ;;  %vm547_vm14 = vcmask 523264  }
  0x11   :  { %v765_v2 = vld [vmem:[#allocation7 + $0xb8] sm:$0xff]  ;;  %465 = vmatpush.bf16.msra.mxu1 %v757_v1  ;;  %v764_v5 = vld [vmem:[#allocation7 + $0xb0] sm:$0xff]  ;;  %v755_v7 = vld [vmem:[#allocation7 + $0x68] sm:$0xff]  ;;  %vm230_vm9 = vsmask.f32 7424  ;;  %s608_s19 = sshll.u32 %s1133_s5, 4  ;;  %s609_s19 = int_to_ptr.hbm [resolvable:$true] %s608_s19 }
  0x12   :  { %494 = vmatpush.bf16.msra.mxu2 %v765_v2  ;;  %v763_v8 = vld [vmem:[#allocation7 + $0xa8] sm:$0xff]  ;;  %v746_v9 = vld [vmem:[#allocation7 + $0x20] sm:$0xff]  ;;  %v806_v12 = vld [vmem:[#allocation5] ss:$0 sm:$0xff]  ;;  %s961_s5 = smov [#allocation9]   ;;  %s622_s23 = sshll.u32 %s1134_s6, 4  ;;  %s623_s23 = int_to_ptr.hbm [resolvable:$true] %s622_s23 }
  0x13   :  { %v70_v10 = vld [vmem:[#allocation2] sm:$0xff]  ;;  %v71_v11 = vld [vmem:[#allocation2 + $0x8] sm:$0xff]  ;;  %v72_v15 = vld [vmem:[#allocation2 + $0x10] sm:$0xff]  ;;  %s620_s20 = sshll.u32 %s961_s5, 4  ;;  %vm600_vm15 = vcmask 517120   ;;  %s621_s20 = int_to_ptr.vmem [resolvable:$true] %s620_s20 }
  0x14   :  { %437 = vmatpush.bf16.msra.mxu0 %v748_v3  ;;  %790 = vmatpush.bf16.msra.mxu3 %v748_v3  ;;  %v807_v13 = vld [vmem:[%s1130_s2] ss:$0 sm:$0xff]  ;;  %v754_v14 = vld [vmem:[#allocation7 + $0x60] sm:$0xff]  ;;  %v73_v16 = vld [vmem:[#allocation2 + $0x18] sm:$0xff]  ;;  %v82_v18 = vmul.f32 %v806_v12, %v70_v10  ;;  %v83_v19 = vmul.f32 %v806_v12, %v71_v11  ;;  %v84_v20 = vmul.f32 %v806_v12, %v72_v15 }
  0x15   :  { %466 = vmatpush.bf16.msra.mxu1 %v756_v4  ;;  %v762_v17 = vld [vmem:[#allocation7 + $0xa0] sm:$0xff]  ;;  %v85_v23 = vmul.f32 %v806_v12, %v73_v16  ;;  %v745_v29 = vld [vmem:[#allocation7 + $0x18] sm:$0xff]  ;;  %v76_v39 = vld [vmem:[#allocation2 + $0x30] sm:$0xff] }
  0x16   :  { %495 = vmatpush.bf16.msra.mxu2 %v764_v5  ;;  %v74_v21 = vld [vmem:[#allocation2 + $0x20] sm:$0xff]  ;;  %v75_v22 = vld [vmem:[#allocation2 + $0x28] sm:$0xff]  ;;  %v1012_v26 = vadd.f32 %v807_v13, %v82_v18  ;;  %v1014_v27 = vadd.f32 %v807_v13, %v83_v19  ;;  %v1016_v28 = vadd.f32 %v807_v13, %v84_v20  ;;  %v77_v40 = vld [vmem:[#allocation2 + $0x38] sm:$0xff]  ;;  %v88_v50 = vmul.f32 %v806_v12, %v76_v39 }
  0x17   :  { %v86_v24 = vmul.f32 %v806_v12, %v74_v21  ;;  %v87_v25 = vmul.f32 %v806_v12, %v75_v22  ;;  %v753_v30 = vld [vmem:[#allocation7 + $0x58] sm:$0xff]  ;;  %v1018_v31 = vadd.f32 %v807_v13, %v85_v23  ;;  %v744_v41 = vld [vmem:[#allocation7 + $0x10] sm:$0xff]  ;;  %v89_v51 = vmul.f32 %v806_v12, %v77_v40  ;;  %v743_v55 = vld [vmem:[#allocation7 + $0x8] sm:$0xff] }
  0x18   :  { %438 = vmatpush.bf16.msra.mxu0 %v747_v6  ;;  %791 = vmatpush.bf16.msra.mxu3 %v747_v6  ;;  %v761_v34 = vld [vmem:[#allocation7 + $0x98] sm:$0xff]  ;;  %v110_v35 = vmin.f32 %v1012_v26, 0.0  ;;  %v111_v36 = vmin.f32 %v1014_v27, 0.0  ;;  %v112_v37 = vmin.f32 %v1016_v28, 0.0  ;;  %v752_v42 = vld [vmem:[#allocation7 + $0x50] sm:$0xff]  ;;  %v1030_v54 = vadd.f32 %v807_v13, %v88_v50  ;;  %v751_v56 = vld [vmem:[#allocation7 + $0x48] sm:$0xff] }
  0x19   :  { %467 = vmatpush.bf16.msra.mxu1 %v755_v7  ;;  %v1020_v32 = vadd.f32 %v807_v13, %v86_v24  ;;  %v1022_v33 = vadd.f32 %v807_v13, %v87_v25  ;;  %v113_v38 = vmin.f32 %v1018_v31, 0.0  ;;  %v760_v49 = vld [vmem:[#allocation7 + $0x90] sm:$0xff]  ;;  %v1032_v57 = vadd.f32 %v807_v13, %v89_v51  ;;  %v759_v58 = vld [vmem:[#allocation7 + $0x88] sm:$0xff]  ;;  %v742_v62 = vld [vmem:[#allocation7] sm:$0xff] }
  0x1a   :  { %496 = vmatpush.bf16.msra.mxu2 %v763_v8  ;;  %v118_v43 = vmul.f32 1.442695, %v110_v35  ;;  %v120_v44 = vmul.f32 1.442695, %v111_v36  ;;  %v122_v45 = vmul.f32 1.442695, %v112_v37  ;;  %vm1061_vm10 = vmand %vm210_vm6, %vm211_vm7 }
  0x1b   :  { %v124_v46 = vmul.f32 1.442695, %v113_v38  ;;  %v114_v47 = vmin.f32 %v1020_v32, 0.0  ;;  %v115_v48 = vmin.f32 %v1022_v33, 0.0  ;;  %vm102_vm0 = vcmp.gt.f32.partialorder %v1012_v26, 0.0  ;;  %v750_v63 = vld [vmem:[#allocation7 + $0x40] sm:$0xff]  ;;  %vm1065_vm11 = vmand %vm229_vm8, %vm230_vm9 }
  0x1c   :  { %439 = vmatpush.bf16.msra.mxu0 %v746_v9  ;;  %792 = vmatpush.bf16.msra.mxu3 %v746_v9  ;;  %809 = vpow2.f32 %v118_v43  ;;  %v116_v60 = vmin.f32 %v1030_v54, 0.0  ;;  %vm103_vm1 = vcmp.gt.f32.partialorder %v1014_v27, 0.0  ;;  %v117_v1 = vmin.f32 %v1032_v57, 0.0  ;;  %v758_v3 = vld [vmem:[#allocation7 + $0x80] sm:$0xff] }
  0x1d   :  { %468 = vmatpush.bf16.msra.mxu1 %v754_v14  ;;  %811 = vpow2.f32 %v120_v44  ;;  %v126_v52 = vmul.f32 1.442695, %v114_v47  ;;  %v128_v53 = vmul.f32 1.442695, %v115_v48  ;;  %vm104_vm2 = vcmp.gt.f32.partialorder %v1016_v28, 0.0 }
  0x1e   :  { %497 = vmatpush.bf16.msra.mxu2 %v762_v17  ;;  %813 = vpow2.f32 %v122_v45  ;;  %vm105_vm3 = vcmp.gt.f32.partialorder %v1018_v31, 0.0  ;;  %vm106_vm4 = vcmp.gt.f32.partialorder %v1020_v32, 0.0  ;;  %vm107_vm5 = vcmp.gt.f32.partialorder %v1022_v33, 0.0 }
  0x1f   :  { %815 = vpow2.f32 %v124_v46  ;;  %v130_v12 = vmul.f32 1.442695, %v116_v60  ;;  %v132_v17 = vmul.f32 1.442695, %v117_v1  ;;  %vm108_vm12 = vcmp.gt.f32.partialorder %v1030_v54, 0.0 }
  0x20   :  { %440 = vmatpush.bf16.msra.mxu0 %v745_v29  ;;  %793 = vmatpush.bf16.msra.mxu3 %v745_v29  ;;  %817 = vpow2.f32 %v126_v52  ;;  %vm109_vm13 = vcmp.gt.f32.partialorder %v1032_v57, 0.0 }
  0x21   :  { %469 = vmatpush.bf16.msra.mxu1 %v753_v30  ;;  %819 = vpow2.f32 %v128_v53 }
  0x22   :  { %498 = vmatpush.bf16.msra.mxu2 %v761_v34  ;;  %v810_v59 = vpop.eup %809  ;;  %821 = vpow2.f32 %v130_v12 }
  0x23   :  { %v812_v61 = vpop.eup %811  ;;  %v638_v0 = vadd.f32 -1.0, %v810_v59  ;;  %823 = vpow2.f32 %v132_v17 }
  0x24   :  { %441 = vmatpush.bf16.msra.mxu0 %v744_v41  ;;  %794 = vmatpush.bf16.msra.mxu3 %v744_v41  ;;  %v814_v2 = vpop.eup %813  ;;  %v639_v4 = vadd.f32 -1.0, %v812_v61 }
  0x25   :  { %470 = vmatpush.bf16.msra.mxu1 %v752_v42  ;;  %v816_v5 = vpop.eup %815  ;;  %v142_v6 = vsel %vm102_vm0, %v1012_v26, %v638_v0  ;;  %v640_v7 = vadd.f32 -1.0, %v814_v2 }
  0x26   :  { %499 = vmatpush.bf16.msra.mxu2 %v760_v49  ;;  %v818_v8 = vpop.eup %817  ;;  %v143_v9 = vsel %vm103_vm1, %v1014_v27, %v639_v4  ;;  %v150_v10 = vpack.c.bf16 %v142_v6, %v142_v6  ;;  %v641_v11 = vadd.f32 -1.0, %v816_v5 }
  0x27   :  { %v820_v13 = vpop.eup %819  ;;  %v151_v14 = vpack.c.bf16 %v143_v9, %v143_v9  ;;  %v144_v15 = vsel %vm104_vm2, %v1016_v28, %v640_v7  ;;  %v642_v16 = vadd.f32 -1.0, %v818_v8 }
  0x28   :  { %442 = vmatpush.bf16.msra.mxu0 %v743_v55  ;;  %795 = vmatpush.bf16.msra.mxu3 %v743_v55  ;;  %v166_v18 = vunpack.c.l.b16 %v150_v10  ;;  %v145_v19 = vsel %vm105_vm3, %v1018_v31, %v641_v11  ;;  %v152_v20 = vpack.c.bf16 %v144_v15, %v144_v15  ;;  %v643_v21 = vadd.f32 -1.0, %v820_v13  ;;  %v822_v41 = vpop.eup %821 }
  0x29   :  { %471 = vmatpush.bf16.msra.mxu1 %v751_v56  ;;  %v167_v22 = vunpack.c.l.b16 %v151_v14  ;;  %v153_v23 = vpack.c.bf16 %v145_v19, %v145_v19  ;;  %v146_v24 = vsel %vm106_vm4, %v1020_v32, %v642_v16  ;;  %v824_v43 = vpop.eup %823  ;;  %v644_v51 = vadd.f32 -1.0, %v822_v41  ;;  %v1092_v19 = vld [vmem:[%s1132_s4] ss:$0 sm:$0xff]  ;;  %s960_s4 = smov [#allocation8]  }
  0x2a   :  { %500 = vmatpush.bf16.msra.mxu2 %v759_v58  ;;  %v168_v25 = vunpack.c.l.b16 %v152_v20  ;;  %v147_v26 = vsel %vm107_vm5, %v1022_v33, %v643_v21  ;;  %v154_v27 = vpack.c.bf16 %v146_v24, %v146_v24  ;;  %v645_v52 = vadd.f32 -1.0, %v824_v43  ;;  %s606_s16 = sshll.u32 %s960_s4, 4  ;;  %s607_s16 = int_to_ptr.vmem [resolvable:$true] %s606_s16 }
  0x2b   :  { %v174_v28 = vpack.c.b16 %v167_v22, %v166_v18  ;;  %v169_v29 = vunpack.c.l.b16 %v153_v23  ;;  %v155_v30 = vpack.c.bf16 %v147_v26, %v147_v26  ;;  %v148_v56 = vsel %vm108_vm12, %v1030_v54, %v644_v51 }
  0x2c   :  { %443 = vmatpush.bf16.msra.mxu0 %v742_v62  ;;  %796 = vmatpush.bf16.msra.mxu3 %v742_v62  ;;  %v170_v32 = vunpack.c.l.b16 %v154_v27  ;;  %v149_v58 = vsel %vm109_vm13, %v1032_v57, %v645_v52  ;;  %v156_v62 = vpack.c.bf16 %v148_v56, %v148_v56 }
  0x2d   :  { %472 = vmatpush.bf16.msra.mxu1 %v750_v63  ;;  %v179_v31 = vshrl.u32 %v174_v28, 16  ;;  %v182_v34 = vshll.u32 %v174_v28, 16  ;;  %v175_v35 = vpack.c.b16 %v169_v29, %v168_v25  ;;  %v171_v36 = vunpack.c.l.b16 %v155_v30 }
  0x2e   :  { %501 = vmatpush.bf16.msra.mxu2 %v758_v3  ;;  %v157_v63 = vpack.c.bf16 %v149_v58, %v149_v58  ;;  %v172_v2 = vunpack.c.l.b16 %v156_v62 }
  0x2f   :  { %v181_v37 = vrot.slane %v179_v31, 7  ;;  %v217_v38 = vrot.slane %v182_v34, 1  ;;  %v186_v39 = vshrl.u32 %v175_v35, 16  ;;  %v189_v40 = vshll.u32 %v175_v35, 16 }
  0x30   :  { %473 = vmatmul.bf16.vlgmr.msra.gmra.mxu1 %v174_v28  ;;  %v176_v50 = vpack.c.b16 %v171_v36, %v170_v32  ;;  %v173_v3 = vunpack.c.l.b16 %v157_v63 }
  0x31   :  { %v184_v44 = vor.u32 %v182_v34, %v181_v37  ;;  %v218_v45 = vor.u32 %v217_v38, %v179_v31  ;;  %v188_v46 = vrot.slane %v186_v39, 7  ;;  %v219_v59 = vrot.slane %v189_v40, 1 }
  0x32   :  { %v193_v55 = vshrl.u32 %v176_v50, 16  ;;  %v196_v61 = vshll.u32 %v176_v50, 16  ;;  %v177_v6 = vpack.c.b16 %v173_v3, %v172_v2 }
  0x33   :  { %v213_v47 = vsel %vm1061_vm10, 0, %v184_v44  ;;  %v232_v48 = vsel %vm1065_vm11, %v218_v45, 0  ;;  %v191_v49 = vor.u32 %v189_v40, %v188_v46  ;;  %v220_v0 = vor.u32 %v219_v59, %v186_v39 }
  0x34   :  { %444 = vmatmul.bf16.vlgmr.msra.gmra.mxu0 %v213_v47  ;;  %502 = vmatmul.bf16.vlgmr.msra.gmra.mxu2 %v232_v48  ;;  %v195_v60 = vrot.slane %v193_v55, 7  ;;  %v200_v54 = vshrl.u32 %v177_v6, 16  ;;  %v221_v57 = vrot.slane %v196_v61, 1  ;;  %v203_v8 = vshll.u32 %v177_v6, 16 }
  0x35   :  { %v214_v53 = vsel %vm1061_vm10, 0, %v191_v49  ;;  %v233_v4 = vsel %vm1065_vm11, %v220_v0, 0 }
  0x36   :  { %449 = vmatmul.bf16.vlgmr.msra.gmra.mxu3 %v214_v53  ;;  %v198_v1 = vor.u32 %v196_v61, %v195_v60  ;;  %v202_v7 = vrot.slane %v200_v54, 7  ;;  %v222_v9 = vor.u32 %v221_v57, %v193_v55  ;;  %v223_v13 = vrot.slane %v203_v8, 1 }
  0x38   :  { %v215_v5 = vsel %vm1061_vm10, 0, %v198_v1  ;;  %v205_v10 = vor.u32 %v203_v8, %v202_v7  ;;  %v234_v11 = vsel %vm1065_vm11, %v222_v9, 0  ;;  %v224_v14 = vor.u32 %v223_v13, %v200_v54 }
  0x3a   :  { %v216_v12 = vsel %vm1061_vm10, 0, %v205_v10  ;;  %v235_v15 = vsel %vm1065_vm11, %v224_v14, 0 }
  0x40   :  { %478 = vmatmul.bf16.gmra.mxu1 %v175_v35 }
  0x44   :  { %507 = vmatmul.bf16.gmra.mxu2 %v233_v4 }
  0x46   :  { %454 = vmatmul.bf16.gmra.mxu3 %v215_v5 }
  0x50   :  { %483 = vmatmul.bf16.gmra.mxu1 %v176_v50 }
  0x54   :  { %512 = vmatmul.bf16.gmra.mxu2 %v234_v11 }
  0x56   :  { %459 = vmatmul.bf16.gmra.mxu3 %v216_v12 }
  0x60   :  { %488 = vmatmul.bf16.gmra.mxu1 %v177_v6 }
  0x64   :  { %517 = vmatmul.bf16.gmra.mxu2 %v235_v15 }
  0xad   :  { %v474_v16 = vpop.f32.mrf.mxu1 }
  0xb1   :  { %v445_v17 = vpop.f32.mrf.mxu0 }
  0xb2   :  { %v446_v21 = vadd.f32 %v1092_v19, %v445_v17 }
  0xb4   :  { %v475_v26 = vadd.f32 %v474_v16, %v446_v21 }
  0xb5   :  { %v476_v18 = vpop.f32.mrf.mxu1 }
  0xb7   :  { %v503_v20 = vpop.f32.mrf.mxu2 }
  0xb8   :  { %v504_v29 = vadd.f32 %v503_v20, %v475_v26 }
  0xb9   :  { %v447_v22 = vpop.f32.mrf.mxu0  ;;  %v450_v23 = vpop.f32.mrf.mxu3 }
  0xba   :  { %v448_v24 = vadd.f32 %v1092_v19, %v447_v22  ;;  %v451_v36 = vadd.f32 %v1092_v19, %v450_v23  ;;  %v523_v53 = vpack.c.bf16 %v504_v29, %v504_v29 }
  0xbc   :  { %v477_v27 = vadd.f32 %v476_v18, %v448_v24  ;;  %v539_v2 = vunpack.c.l.bf16 %v523_v53 }
  0xbd   :  { %v479_v25 = vpop.f32.mrf.mxu1 }
  0xbe   :  { %v480_v33 = vadd.f32 %v479_v25, %v451_v36  ;;  %v569_v7 = vmul.f32 %v539_v2, %v539_v2  ;;  %v548_v13 = vsel %vm547_vm14, %v539_v2, 0.0 }
  0xbf   :  { %v505_v28 = vpop.f32.mrf.mxu2 }
  0xc0   :  { %v506_v30 = vadd.f32 %v505_v28, %v477_v27  ;;  %v577_v21 = vsel %vm547_vm14, %v569_v7, 0.0 }
  0xc1   :  { %v452_v31 = vpop.f32.mrf.mxu3 }
  0xc2   :  { %v769_v34 = vpack.c.bf16 %v506_v30, %v504_v29  ;;  %v453_v38 = vadd.f32 %v1092_v19, %v452_v31  ;;  %v524_v51 = vpack.c.bf16 %v506_v30, %v506_v30 }
  0xc4   :  { %770 = vst [vmem:[#allocation8] sm:$0xff] %v769_v34   ;;  %v540_v62 = vunpack.c.l.bf16 %v524_v51 }
  0xc5   :  { %v481_v35 = vpop.f32.mrf.mxu1 }
  0xc6   :  { %v482_v40 = vadd.f32 %v481_v35, %v453_v38  ;;  %v570_v6 = vmul.f32 %v540_v62, %v540_v62  ;;  %v549_v10 = vsel %vm547_vm14, %v540_v62, 0.0 }
  0xc7   :  { %v508_v32 = vpop.f32.mrf.mxu2  ;;  %v550_v22 = vadd.f32 %v549_v10, %v548_v13 }
  0xc8   :  { %v509_v42 = vadd.f32 %v508_v32, %v480_v33  ;;  %v578_v14 = vsel %vm547_vm14, %v570_v6, 0.0 }
  0xc9   :  { %v455_v37 = vpop.f32.mrf.mxu3  ;;  %v579_v29 = vadd.f32 %v578_v14, %v577_v21 }
  0xca   :  { %v456_v48 = vadd.f32 %v1092_v19, %v455_v37  ;;  %v525_v55 = vpack.c.bf16 %v509_v42, %v509_v42 }
  0xcc   :  { %v541_v3 = vunpack.c.l.bf16 %v525_v55 }
  0xcd   :  { %v484_v39 = vpop.f32.mrf.mxu1 }
  0xce   :  { %v485_v49 = vadd.f32 %v484_v39, %v456_v48  ;;  %v571_v8 = vmul.f32 %v541_v3, %v541_v3  ;;  %v551_v16 = vsel %vm547_vm14, %v541_v3, 0.0 }
  0xcf   :  { %v510_v41 = vpop.f32.mrf.mxu2  ;;  %v552_v30 = vadd.f32 %v551_v16, %v550_v22 }
  0xd0   :  { %v511_v43 = vadd.f32 %v510_v41, %v482_v40  ;;  %v580_v23 = vsel %vm547_vm14, %v571_v8, 0.0 }
  0xd1   :  { %v457_v45 = vpop.f32.mrf.mxu3  ;;  %v581_v36 = vadd.f32 %v580_v23, %v579_v29 }
  0xd2   :  { %v774_v44 = vpack.c.bf16 %v511_v43, %v509_v42  ;;  %v458_v50 = vadd.f32 %v1092_v19, %v457_v45  ;;  %v526_v0 = vpack.c.bf16 %v511_v43, %v511_v43 }
  0xd4   :  { %786 = vst [vmem:[#allocation8 + $0x8] sm:$0xff] %v774_v44   ;;  %v542_v54 = vunpack.c.l.bf16 %v526_v0 }
  0xd5   :  { %v486_v47 = vpop.f32.mrf.mxu1 }
  0xd6   :  { %v487_v52 = vadd.f32 %v486_v47, %v458_v50  ;;  %v572_v17 = vmul.f32 %v542_v54, %v542_v54  ;;  %v553_v25 = vsel %vm547_vm14, %v542_v54, 0.0 }
  0xd7   :  { %v513_v46 = vpop.f32.mrf.mxu2  ;;  %v554_v37 = vadd.f32 %v553_v25, %v552_v30 }
  0xd8   :  { %v514_v59 = vadd.f32 %v513_v46, %v485_v49  ;;  %v582_v31 = vsel %vm547_vm14, %v572_v17, 0.0 }
  0xd9   :  { %v460_v56 = vpop.f32.mrf.mxu3  ;;  %v583_v41 = vadd.f32 %v582_v31, %v581_v36 }
  0xda   :  { %v461_v60 = vadd.f32 %v1092_v19, %v460_v56  ;;  %v527_v4 = vpack.c.bf16 %v514_v59, %v514_v59 }
  0xdc   :  { %v543_v11 = vunpack.c.l.bf16 %v527_v4 }
  0xdd   :  { %v489_v63 = vpop.f32.mrf.mxu1 }
  0xde   :  { %v490_v5 = vadd.f32 %v489_v63, %v461_v60  ;;  %v573_v26 = vmul.f32 %v543_v11, %v543_v11  ;;  %v555_v34 = vsel %vm547_vm14, %v543_v11, 0.0 }
  0xdf   :  { %v515_v58 = vpop.f32.mrf.mxu2  ;;  %v556_v42 = vadd.f32 %v555_v34, %v554_v37 }
  0xe0   :  { %v516_v61 = vadd.f32 %v515_v58, %v487_v52 }
  0xe1   :  { %v462_v15 = vpop.f32.mrf.mxu3 }
  0xe2   :  { %v779_v1 = vpack.c.bf16 %v516_v61, %v514_v59  ;;  %v528_v57 = vpack.c.bf16 %v516_v61, %v516_v61  ;;  %v463_v27 = vadd.f32 %v1092_v19, %v462_v15  ;;  %v584_v19 = vsel %vm547_vm14, %v573_v26, 0.0 }
  0xe3   :  { %v585_v47 = vadd.f32 %v584_v19, %v583_v41 }
  0xe4   :  { %787 = vst [vmem:[#allocation8 + $0x10] sm:$0xff] %v779_v1   ;;  %v544_v18 = vunpack.c.l.bf16 %v528_v57 }
  0xe5   :  { %v491_v24 = vpop.f32.mrf.mxu1 }
  0xe6   :  { %v574_v35 = vmul.f32 %v544_v18, %v544_v18  ;;  %v492_v32 = vadd.f32 %v491_v24, %v463_v27  ;;  %v557_v38 = vsel %vm547_vm14, %v544_v18, 0.0 }
  0xe7   :  { %v518_v9 = vpop.f32.mrf.mxu2  ;;  %v558_v48 = vadd.f32 %v557_v38, %v556_v42 }
  0xe8   :  { %v519_v12 = vadd.f32 %v518_v9, %v490_v5  ;;  %v586_v43 = vsel %vm547_vm14, %v574_v35, 0.0 }
  0xe9   :  { %v587_v51 = vadd.f32 %v586_v43, %v585_v47 }
  0xea   :  { %v529_v20 = vpack.c.bf16 %v519_v12, %v519_v12 }
  0xec   :  { %v545_v28 = vunpack.c.l.bf16 %v529_v20 }
  0xee   :  { %v575_v39 = vmul.f32 %v545_v28, %v545_v28  ;;  %v559_v44 = vsel %vm547_vm14, %v545_v28, 0.0 }
  0xef   :  { %v520_v33 = vpop.f32.mrf.mxu2  ;;  %v560_v52 = vadd.f32 %v559_v44, %v558_v48 }
  0xf0   :  { %v521_v40 = vadd.f32 %v520_v33, %v492_v32  ;;  %v588_v49 = vsel %vm547_vm14, %v575_v39, 0.0 }
  0xf1   :  { %v589_v56 = vadd.f32 %v588_v49, %v587_v51 }
  0xf2   :  { %v530_v45 = vpack.c.bf16 %v521_v40, %v521_v40  ;;  %v784_v46 = vpack.c.bf16 %v521_v40, %v519_v12 }
  0xf4   :  { %788 = vst [vmem:[#allocation8 + $0x18] sm:$0xff] %v784_v46   ;;  %v546_v50 = vunpack.c.l.bf16 %v530_v45 }
  0xf5   :  { %614 = dma.vmem_to_hbm [thread:$0]  %s607_s16, 512, %s609_s19, [#allocation4], %s958_s13, %s958_s13, %s959_s14  }
  0xf6   :  { %v561_v53 = vsel %vm547_vm14, %v546_v50, 0.0  ;;  %v576_v55 = vmul.f32 %v546_v50, %v546_v50 }
  0xf7   :  { %v562_v58 = vadd.f32 %v561_v53, %v560_v52 }
  0xf8   :  { %v590_v59 = vsel %vm547_vm14, %v576_v55, 0.0 }
  0xf9   :  { %v563_v60 = vrot.slane %v562_v58, 4  ;;  %v591_v61 = vadd.f32 %v590_v59, %v589_v56 }
  0xfb   :  { %v564_v62 = vadd.f32 %v563_v60, %v562_v58  ;;  %v592_v63 = vrot.slane %v591_v61, 4 }
  0xfd   :  { %v565_v0 = vrot.slane %v564_v62, 2  ;;  %v593_v1 = vadd.f32 %v592_v63, %v591_v61 }
  0xff   :  { %v566_v2 = vadd.f32 %v565_v0, %v564_v62  ;;  %v594_v3 = vrot.slane %v593_v1, 2 }
 0x101   :  { %v567_v4 = vrot.slane %v566_v2, 1  ;;  %v595_v5 = vadd.f32 %v594_v3, %v593_v1 }
 0x103   :  { %v596_v6 = vrot.slane %v595_v5, 1  ;;  %v568_v54 = vadd.f32 %v567_v4, %v566_v2 }
 0x105   :  { %v597_v57 = vadd.f32 %v596_v6, %v595_v5 }
 0x107   :  { %v599_v7 = vsel %vm210_vm6, %v568_v54, %v597_v57 }
 0x108   :  { %601 = vst.msk [vmem:[#allocation9] sm:$0x3] %vm600_vm15, %v599_v7 }
 0x109   :  { %625 = dma.vmem_to_hbm [thread:$0]  %s621_s20, 32, %s623_s23, [#allocation10]  }
 0x10a   :  { %949 = dma.done.wait [#allocation4], 512  }
 0x10b   :  { %950 = vsyncadd [#allocation4], 4294966784 }
 0x10c   :  { %951 = dma.done.wait [#allocation10], 32  }
 0x10d   :  { %952 = vsyncadd [#allocation10], 4294967264 }
 0x10e   :  { %634 = vsyncpa [#allocation3], 1 }
 0x10f   :  { %635 = vsyncpa [#allocation6], 1 }
 0x110   :  { %636 = vsyncpa [#allocation4], 1 }
 0x111   :  { %637 = vsyncpa [#allocation10], 1 }

</bundles_post_ra>
